<compile_context>
chip_gen: v5e
topology: v5e:2x2
jax: 0.10.0
libtpu: 0.0.40
codegen_flags: <defaults>
</compile_context>

<pallas_src>
import functools

import jax
import jax.numpy as jnp
from jax import lax
from jax.experimental import pallas as pl
from jax.experimental.pallas import tpu as pltpu


def _ls_ce_kernel(preds_ref, target_ref, out_ref, acc_ref, *,
                  eps_over_c, one_minus_eps, n_valid, block_rows,
                  blocks_per_split):
    o = pl.program_id(0)            # parallel split (TensorCore on v7x)
    i = pl.program_id(1)            # reduction step within the split

    @pl.when(i == 0)
    def _():
        acc_ref[...] = jnp.zeros_like(acc_ref)

    x = preds_ref[...].astype(jnp.float32)                 # (TB, C)
    tb, c = x.shape

    # Numerically stable log-sum-exp per row (class axis on lanes).
    m = jnp.max(x, axis=-1, keepdims=True)                  # (TB, 1)
    sumexp = jnp.sum(jnp.exp(x - m), axis=-1, keepdims=True)
    lse = m + jnp.log(sumexp)                                # (TB, 1)

    # -sum_j logp = C*lse - sum_j x   (no full-tile logp temporary)
    sum_x = jnp.sum(x, axis=-1, keepdims=True)               # (TB, 1)
    neg_sum_logp = jnp.float32(c) * lse - sum_x

    # nll = lse - x[target]  (select-and-reduce; no f32 onehot tensor)
    tgt = target_ref[...]                                    # (TB, 1) int32
    col = lax.broadcasted_iota(jnp.int32, x.shape, 1)
    x_tgt = jnp.sum(jnp.where(col == tgt, x, 0.0), axis=-1, keepdims=True)
    nll = lse - x_tgt                                         # (TB, 1)

    # Mask padded tail rows.
    block_global = o * blocks_per_split + i
    row_ids = block_global * block_rows + lax.broadcasted_iota(
        jnp.int32, (tb, 1), 0)
    valid = (row_ids < n_valid).astype(jnp.float32)

    per_row = (jnp.float32(eps_over_c) * neg_sum_logp
               + jnp.float32(one_minus_eps) * nll) * valid    # (TB, 1)
    acc_ref[...] += per_row

    @pl.when(i == pl.num_programs(1) - 1)
    def _():
        total = jnp.sum(acc_ref[...])                         # split partial sum
        r = lax.broadcasted_iota(jnp.int32, (1, 8, 128), 1)
        cc = lax.broadcasted_iota(jnp.int32, (1, 8, 128), 2)
        out_ref[...] = jnp.where((r == 0) & (cc == 0), total, 0.0)


def _pick_block_rows(n, c, *, target_tile_bytes=2 << 20, max_rows=1024):
    """Largest row tile (multiple of 16) with ~2 MiB f32 footprint, capped by N."""
    rows = target_tile_bytes // (4 * c)
    rows = max(16, min(int(rows), max_rows))
    rows = (rows // 16) * 16
    n_pad = ((n + 15) // 16) * 16
    rows = min(rows, n_pad)
    return max(16, (rows // 16) * 16)


def label_smoothing_cross_entropy(preds, target, *, epsilon=0.1,
                                  block_rows=None, num_splits=None):
    """preds: (N, C) float32/bfloat16; target: (N,) int. Returns scalar f32 ('mean')."""
    n, c = preds.shape
    if block_rows is None:
        block_rows = _pick_block_rows(n, c)
    assert block_rows % 8 == 0

    total_blocks = -(-n // block_rows)
    if num_splits is None:
        num_splits = 2 if total_blocks >= 2 else 1
    num_splits = max(1, min(num_splits, total_blocks))
    blocks_per_split = -(-total_blocks // num_splits)
    n_padded = num_splits * blocks_per_split * block_rows

    target2d = target.astype(jnp.int32).reshape(n, 1)
    preds_p = preds
    if n_padded != n:
        preds_p = jnp.pad(preds, ((0, n_padded - n), (0, 0)))
        target2d = jnp.pad(target2d, ((0, n_padded - n), (0, 0)))

    kernel = functools.partial(
        _ls_ce_kernel,
        eps_over_c=float(epsilon) / float(c),
        one_minus_eps=1.0 - float(epsilon),
        n_valid=n,
        block_rows=block_rows,
        blocks_per_split=blocks_per_split)

    # VMEM budget: double-buffered input tiles + f32 temporaries + slack.
    in_bytes = block_rows * c * jnp.dtype(preds.dtype).itemsize
    f32_bytes = block_rows * c * 4
    vmem_limit = int(min(max(4 * in_bytes + 6 * f32_bytes + (2 << 20),
                             32 << 20), 48 << 20))

    partials = pl.pallas_call(
        kernel,
        out_shape=jax.ShapeDtypeStruct((num_splits, 8, 128), jnp.float32),
        grid_spec=pltpu.PrefetchScalarGridSpec(
            num_scalar_prefetch=0,
            grid=(num_splits, blocks_per_split),
            in_specs=[
                pl.BlockSpec((block_rows, c),
                             lambda o, i: (o * blocks_per_split + i, 0)),
                pl.BlockSpec((block_rows, 1),
                             lambda o, i: (o * blocks_per_split + i, 0)),
            ],
            out_specs=pl.BlockSpec((1, 8, 128), lambda o, i: (o, 0, 0)),
            scratch_shapes=[pltpu.VMEM((block_rows, 1), jnp.float32)],
        ),
        compiler_params=pltpu.CompilerParams(
            dimension_semantics=("parallel", "arbitrary"),
            vmem_limit_bytes=vmem_limit),
    )(preds_p, target2d)

    return jnp.sum(partials) / jnp.float32(n)


def _reference(preds, target, epsilon=0.1):
    logp = jax.nn.log_softmax(preds.astype(jnp.float32), axis=-1)
    n_classes = preds.shape[-1]
    loss = jnp.mean(-jnp.sum(logp, axis=-1))
    nll = jnp.mean(-jnp.take_along_axis(logp, target[:, None], axis=-1)[:, 0])
    return epsilon * (loss / n_classes) + (1.0 - epsilon) * nll


if __name__ == "__main__":
    key = jax.random.PRNGKey(0)
    cases = [
        (10, 32, jnp.float32),      # ragged batch -> padding + row masking
        (2500, 160, jnp.float32),   # multi-block reduction + 2-way parallel split
        (300, 96, jnp.bfloat16),    # bf16 activations (half HBM traffic)
    ]
    for idx, (n, c, dtype) in enumerate(cases):
        k1, k2 = jax.random.split(jax.random.fold_in(key, idx))
        preds = jax.random.normal(k1, (n, c), dtype=jnp.float32).astype(dtype)
        target = jax.random.randint(k2, (n,), 0, c, dtype=jnp.int32)

        out = jax.block_until_ready(
            label_smoothing_cross_entropy(preds, target, epsilon=0.1))
        ref = _reference(preds, target, epsilon=0.1)
        assert jnp.allclose(out, ref, rtol=1e-5, atol=1e-5), (n, c, dtype, out, ref)

    print("KERNEL_OK")
</pallas_src>

<mosaic_0001>
module attributes {stable_mosaic.version = 11 : i64} {
  func.func @_ls_ce_kernel(%arg0: i32, %arg1: i32, %arg2: memref<16x32xf32, #tpu.memory_space<vmem>>, %arg3: memref<16x1xi32, #tpu.memory_space<vmem>>, %arg4: memref<1x8x128xf32, #tpu.memory_space<vmem>>, %arg5: memref<16x1xf32, #tpu.memory_space<vmem>>) attributes {dimension_semantics = [#tpu.dimension_semantics<parallel>, #tpu.dimension_semantics<arbitrary>], iteration_bounds = array<i64: 1, 1>, scalar_prefetch = 0 : i64, scratch_operands = 1 : i64, tpu.core_type = #tpu.core_type<tc>, window_params = [{transform_indices = @transform_0, window_bounds = array<i64: 16, 32>}, {transform_indices = @transform_1, window_bounds = array<i64: 16, 1>}, {transform_indices = @transform_2, window_bounds = array<i64: 1, 8, 128>}]} {
    %c0_i32 = arith.constant 0 : i32
    %0 = arith.cmpi eq, %arg1, %c0_i32 : i32
    %1 = arith.extui %0 : i1 to i32
    %c0_i32_0 = arith.constant 0 : i32
    %2 = arith.cmpi ne, %1, %c0_i32_0 : i32
    scf.if %2 {
      %cst_17 = arith.constant 0.000000e+00 : f32
      %49 = vector.broadcast %cst_17 : f32 to vector<16x1xf32>
      %c0_18 = arith.constant 0 : index
      %c0_19 = arith.constant 0 : index
      %50 = vector.load %arg5[%c0_18, %c0_19] : memref<16x1xf32, #tpu.memory_space<vmem>>, vector<16x1xf32>
      tpu.vector_store %arg5[%c0_18, %c0_19], %49 {strides = array<i32>} : memref<16x1xf32, #tpu.memory_space<vmem>>, vector<16x1xf32>,
    } else {
    }
    %c0 = arith.constant 0 : index
    %c0_1 = arith.constant 0 : index
    %3 = vector.load %arg2[%c0, %c0_1] : memref<16x32xf32, #tpu.memory_space<vmem>>, vector<16x32xf32>
    %cst = arith.constant dense<0xFF800000> : vector<16xf32>
    %4 = vector.multi_reduction <maximumf>, %3, %cst [1] : vector<16x32xf32> to vector<16xf32>
    %5 = vector.shape_cast %4 : vector<16xf32> to vector<16x1xf32>
    %6 = vector.broadcast %5 : vector<16x1xf32> to vector<16x32xf32>
    %7 = arith.subf %3, %6 : vector<16x32xf32>
    %8 = math.exp %7 : vector<16x32xf32>
    %cst_2 = arith.constant dense<0.000000e+00> : vector<16xf32>
    %9 = vector.multi_reduction <add>, %8, %cst_2 [1] : vector<16x32xf32> to vector<16xf32>
    %10 = vector.shape_cast %9 : vector<16xf32> to vector<16x1xf32>
    %11 = math.log %10 : vector<16x1xf32>
    %12 = arith.addf %5, %11 : vector<16x1xf32>
    %cst_3 = arith.constant dense<0.000000e+00> : vector<16xf32>
    %13 = vector.multi_reduction <add>, %3, %cst_3 [1] : vector<16x32xf32> to vector<16xf32>
    %14 = vector.shape_cast %13 : vector<16xf32> to vector<16x1xf32>
    %cst_4 = arith.constant 3.200000e+01 : f32
    %15 = vector.broadcast %cst_4 : f32 to vector<16x1xf32>
    %16 = arith.mulf %15, %12 : vector<16x1xf32>
    %17 = arith.subf %16, %14 : vector<16x1xf32>
    %c0_5 = arith.constant 0 : index
    %c0_6 = arith.constant 0 : index
    %18 = vector.load %arg3[%c0_5, %c0_6] : memref<16x1xi32, #tpu.memory_space<vmem>>, vector<16x1xi32>
    %19 = tpu.iota {dimensions = array<i32: 1>} : vector<16x32xi32>
    %20 = vector.broadcast %18 : vector<16x1xi32> to vector<16x32xi32>
    %21 = arith.cmpi eq, %19, %20 : vector<16x32xi32>
    %cst_7 = arith.constant 0.000000e+00 : f32
    %22 = vector.broadcast %cst_7 : f32 to vector<16x32xf32>
    %23 = arith.select %21, %3, %22 : vector<16x32xi1>, vector<16x32xf32>
    %cst_8 = arith.constant dense<0.000000e+00> : vector<16xf32>
    %24 = vector.multi_reduction <add>, %23, %cst_8 [1] : vector<16x32xf32> to vector<16xf32>
    %25 = vector.shape_cast %24 : vector<16xf32> to vector<16x1xf32>
    %26 = arith.subf %12, %25 : vector<16x1xf32>
    %c1_i32 = arith.constant 1 : i32
    %27 = arith.muli %arg0, %c1_i32 : i32
    %28 = arith.addi %27, %arg1 : i32
    %c16_i32 = arith.constant 16 : i32
    %29 = arith.muli %28, %c16_i32 : i32
    %30 = tpu.iota {dimensions = array<i32: 0>} : vector<16x1xi32>
    %31 = vector.broadcast %29 : i32 to vector<16x1xi32>
    %32 = arith.addi %31, %30 : vector<16x1xi32>
    %c10_i32 = arith.constant 10 : i32
    %33 = vector.broadcast %c10_i32 : i32 to vector<16x1xi32>
    %34 = arith.cmpi slt, %32, %33 : vector<16x1xi32>
    %35 = arith.extui %34 : vector<16x1xi1> to vector<16x1xi32>
    %36 = arith.sitofp %35 : vector<16x1xi32> to vector<16x1xf32>
    %cst_9 = arith.constant 3.125000e-03 : f32
    %37 = vector.broadcast %cst_9 : f32 to vector<16x1xf32>
    %38 = arith.mulf %37, %17 : vector<16x1xf32>
    %cst_10 = arith.constant 0.899999976 : f32
    %39 = vector.broadcast %cst_10 : f32 to vector<16x1xf32>
    %40 = arith.mulf %39, %26 : vector<16x1xf32>
    %41 = arith.addf %38, %40 : vector<16x1xf32>
    %42 = arith.mulf %41, %36 : vector<16x1xf32>
    %c0_11 = arith.constant 0 : index
    %c0_12 = arith.constant 0 : index
    %43 = vector.load %arg5[%c0_11, %c0_12] : memref<16x1xf32, #tpu.memory_space<vmem>>, vector<16x1xf32>
    %44 = arith.addf %43, %42 : vector<16x1xf32>
    %c0_13 = arith.constant 0 : index
    %c0_14 = arith.constant 0 : index
    %45 = vector.load %arg5[%c0_13, %c0_14] : memref<16x1xf32, #tpu.memory_space<vmem>>, vector<16x1xf32>
    tpu.vector_store %arg5[%c0_13, %c0_14], %44 {strides = array<i32>} : memref<16x1xf32, #tpu.memory_space<vmem>>, vector<16x1xf32>,
    %c0_i32_15 = arith.constant 0 : i32
    %46 = arith.cmpi eq, %arg1, %c0_i32_15 : i32
    %47 = arith.extui %46 : i1 to i32
    %c0_i32_16 = arith.constant 0 : i32
    %48 = arith.cmpi ne, %47, %c0_i32_16 : i32
    scf.if %48 {
      %c0_17 = arith.constant 0 : index
      %c0_18 = arith.constant 0 : index
      %49 = vector.load %arg5[%c0_17, %c0_18] : memref<16x1xf32, #tpu.memory_space<vmem>>, vector<16x1xf32>
      %50 = vector.shape_cast %49 : vector<16x1xf32> to vector<1x16x1xf32>
      %cst_19 = arith.constant dense<0.000000e+00> : vector<1xf32>
      %51 = vector.multi_reduction <add>, %50, %cst_19 [1, 2] : vector<1x16x1xf32> to vector<1xf32>
      %52 = vector.shape_cast %51 : vector<1xf32> to vector<1x1x1xf32>
      %53 = vector.extract %52[0, 0, 0] : f32 from vector<1x1x1xf32>
      %54 = tpu.iota {dimensions = array<i32: 1>} : vector<1x8x128xi32>
      %55 = tpu.iota {dimensions = array<i32: 2>} : vector<1x8x128xi32>
      %c0_i32_20 = arith.constant 0 : i32
      %56 = vector.broadcast %c0_i32_20 : i32 to vector<1x8x128xi32>
      %57 = arith.cmpi eq, %54, %56 : vector<1x8x128xi32>
      %c0_i32_21 = arith.constant 0 : i32
      %58 = vector.broadcast %c0_i32_21 : i32 to vector<1x8x128xi32>
      %59 = arith.cmpi eq, %55, %58 : vector<1x8x128xi32>
      %60 = arith.andi %57, %59 : vector<1x8x128xi1>
      %cst_22 = arith.constant 0.000000e+00 : f32
      %61 = vector.broadcast %53 : f32 to vector<1x8x128xf32>
      %62 = vector.broadcast %cst_22 : f32 to vector<1x8x128xf32>
      %63 = arith.select %60, %61, %62 : vector<1x8x128xi1>, vector<1x8x128xf32>
      %c0_23 = arith.constant 0 : index
      %c0_24 = arith.constant 0 : index
      %c0_25 = arith.constant 0 : index
      %64 = vector.load %arg4[%c0_23, %c0_24, %c0_25] : memref<1x8x128xf32, #tpu.memory_space<vmem>>, vector<1x8x128xf32>
      tpu.vector_store %arg4[%c0_23, %c0_24, %c0_25], %63 {strides = array<i32>} : memref<1x8x128xf32, #tpu.memory_space<vmem>>, vector<1x8x128xf32>,
    } else {
    }
    return
  }
  func.func @transform_0(%arg0: i32, %arg1: i32) -> (i32, i32) {
    %c1_i32 = arith.constant 1 : i32
    %0 = arith.muli %arg0, %c1_i32 : i32
    %1 = arith.addi %0, %arg1 : i32
    %c0_i32 = arith.constant 0 : i32
    %c0_i32_0 = arith.constant 0 : i32
    return %1, %c0_i32 : i32, i32
  }
  func.func @transform_1(%arg0: i32, %arg1: i32) -> (i32, i32) {
    %c1_i32 = arith.constant 1 : i32
    %0 = arith.muli %arg0, %c1_i32 : i32
    %1 = arith.addi %0, %arg1 : i32
    %c0_i32 = arith.constant 0 : i32
    %c0_i32_0 = arith.constant 0 : i32
    return %1, %c0_i32 : i32, i32
  }
  func.func @transform_2(%arg0: i32, %arg1: i32) -> (i32, i32, i32) {
    %c0_i32 = arith.constant 0 : i32
    %c0_i32_0 = arith.constant 0 : i32
    %c0_i32_1 = arith.constant 0 : i32
    return %arg0, %c0_i32, %c0_i32_0 : i32, i32, i32
  }
}

</mosaic_0001>

<bundles_post_ra>
// kernel: tpu_custom_call.1
= control target key start
LH: loop header
LB: loop body
LE: loop exit
PB: predicated region body
PF: predicated region fallthrough
CT: control target
= control target key end

     0   :  { %vm65_vm0 = vcmask 261120   ;;  %v244_v3 = vmov 0   ;;  %s296_s0 = inlined_call_operand.vmem [shape: f32[16,32], index: 0, kind: input, shape index: {}]   ;;  %s297_s1 = inlined_call_operand.vmem [shape: s32[16,1], index: 1, kind: input, shape index: {}]   ;;  %s298_s2 = inlined_call_operand.hbm [shape: f32[1,8,128], index: 2, kind: output, shape index: {}]  }
   0x1   :  { %v64_v0 = vld [vmem:[%s296_s0 + $0x8] sm:$0xff]  ;;  %208 = vset.pattern.permute.xlu1 %v244_v3  ;;  %209 = vset.pattern.permute.xlu0 %v244_v3 }
   0x2   :  { %v101_v1 = vld [vmem:[%s297_s1 + $0x8] sm:$0xff]  ;;  %v69_v2 = vsel %vm65_vm0, %v64_v0, -inf }
   0x3   :  { %7 = vsyncpa [#allocation4], 0  ;;  %70 = vmax.xlane.f32.xlu0 %v69_v2  ;;  %108 = vperm.xlu1 %208, %v101_v1   ;;  %v63_v4 = vld [vmem:[%s296_s0] sm:$0xff]  ;;  %v93_v7 = vsel %vm65_vm0, %v64_v0, 0.0  ;;  %v102_v8 = vlaneseq  ;;  %vm60_vm3 = vcmask 7168   ;;  %v245_v27 = vmov 0.0  }
   0x4   :  { %v66_v5 = vsel %vm65_vm0, %v63_v4, -inf  ;;  %v100_v6 = vld [vmem:[%s297_s1] sm:$0xff]  ;;  %v90_v26 = vsel %vm65_vm0, %v63_v4, 0.0  ;;  %61 = vst.msk [vmem:[#allocation2] sm:$0xff] %vm60_vm3, %v245_v27  ;;  %s246_s0 = smov [#allocation3]   ;;  %s181_s19 = sshll.u32 %s298_s2, 4  ;;  %s182_s19 = int_to_ptr.hbm [resolvable:$true] %s181_s19 }
   0x5   :  { %v277_v9 = vand.u32 127, %v102_v8  ;;  %62 = vst.msk [vmem:[#allocation2 + $0x8] sm:$0xff] %vm60_vm3, %v245_v27  ;;  %v125_v29 = vshrl.u32 %v102_v8, 7  ;;  %s179_s1 = sshll.u32 %s246_s0, 4  ;;  %s180_s1 = int_to_ptr.vmem [resolvable:$true] %s179_s1 }
   0x7   :  { %v126_v36 = vadd.s32 8, %v125_v29  ;;  %vm168_vm5 = vcmp.eq.s32.totalorder %v125_v29, 0  ;;  %vm169_vm6 = vcmp.eq.s32.totalorder %v277_v9, 0 }
   0x8   :  { %vm170_vm7 = vmand %vm168_vm5, %vm169_vm6 }
   0x9   :  { %vm131_vm4 = vcmp.lt.s32.totalorder %v126_v36, 10 }
   0xa   :  { %v202_v44 = vsel %vm131_vm4, 1.0, %v245_v27 }
   0xb   :  { %67 = vmax.xlane.f32.xlu0 %v66_v5  ;;  %105 = vperm.xlu1 %208, %v100_v6   ;;  %v144_v57 = vld [vmem:[#allocation2] sm:$0xff] }
   0xc   :  { %v145_v47 = vld [vmem:[#allocation2 + $0x8] sm:$0xff] }
  0x13   :  { %94 = vadd.xlane.f32.xlu0 %v93_v7 }
  0x75   :  { %v109_v10 = vpop.permute.xlu1 %108 }
  0x76   :  { %v71_v11 = vpop.xlane.xlu0 %70  ;;  %vm111_vm1 = vcmp.eq.s32.totalorder %v277_v9, %v109_v10 }
  0x77   :  { %v73_v12 = vsub.f32 %v64_v0, %v71_v11  ;;  %v113_v13 = vsel %vm111_vm1, %v64_v0, 0.0 }
  0x78   :  { %v117_v14 = vsel %vm65_vm0, %v113_v13, 0.0 }
  0x79   :  { %v76_v15 = vmul.f32 1.442695, %v73_v12  ;;  %118 = vadd.xlane.f32.xlu1 %v117_v14 }
  0x7b   :  { %210 = vpow2.f32 %v76_v15 }
  0x7d   :  { %v106_v16 = vpop.permute.xlu1 %105 }
  0x7e   :  { %v68_v17 = vpop.xlane.xlu0 %67  ;;  %vm110_vm2 = vcmp.eq.s32.totalorder %v277_v9, %v106_v16 }
  0x7f   :  { %v72_v18 = vsub.f32 %v63_v4, %v68_v17  ;;  %v112_v19 = vsel %vm110_vm2, %v63_v4, 0.0 }
  0x80   :  { %v114_v20 = vsel %vm65_vm0, %v112_v19, 0.0 }
  0x81   :  { %v211_v21 = vpop.eup %210  ;;  %v74_v22 = vmul.f32 1.442695, %v72_v18  ;;  %115 = vadd.xlane.f32.xlu0 %v114_v20 }
  0x82   :  { %v81_v23 = vsel %vm65_vm0, %v211_v21, 0.0 }
  0x83   :  { %212 = vpow2.f32 %v74_v22  ;;  %82 = vadd.xlane.f32.xlu2 %v81_v23 }
  0x86   :  { %v95_v33 = vpop.xlane.xlu0 %94 }
  0x89   :  { %v213_v24 = vpop.eup %212 }
  0x8a   :  { %v78_v25 = vsel %vm65_vm0, %v213_v24, 0.0 }
  0x8b   :  { %79 = vadd.xlane.f32.xlu2 %v78_v25 }
  0x93   :  { %91 = vadd.xlane.f32.xlu2 %v90_v26 }
  0xec   :  { %v119_v34 = vpop.xlane.xlu1 %118 }
  0xf4   :  { %v116_v48 = vpop.xlane.xlu0 %115 }
  0xf6   :  { %v83_v28 = vpop.xlane.xlu2 %82 }
  0xf7   :  { %214 = vlog2.f32 %v83_v28 }
  0xfd   :  { %v215_v30 = vpop.eup %214 }
  0xfe   :  { %v87_v31 = vmul.f32 0.6931472, %v215_v30  ;;  %v80_v32 = vpop.xlane.xlu2 %79 }
  0xff   :  { %216 = vlog2.f32 %v80_v32 }
 0x100   :  { %v89_v35 = vadd.f32 %v87_v31, %v71_v11 }
 0x102   :  { %v97_v37 = vmul.f32 32.0, %v89_v35  ;;  %v121_v38 = vsub.f32 %v89_v35, %v119_v34 }
 0x104   :  { %v99_v39 = vsub.f32 %v97_v37, %v95_v33  ;;  %v139_v43 = vmul.f32 0.9, %v121_v38 }
 0x105   :  { %v217_v40 = vpop.eup %216 }
 0x106   :  { %v137_v41 = vmul.f32 0.003125, %v99_v39  ;;  %v85_v42 = vmul.f32 0.6931472, %v217_v40  ;;  %v92_v49 = vpop.xlane.xlu2 %91 }
 0x108   :  { %v141_v45 = vadd.f32 %v139_v43, %v137_v41  ;;  %v88_v46 = vadd.f32 %v85_v42, %v68_v17 }
 0x10a   :  { %v143_v50 = vmul.f32 %v202_v44, %v141_v45  ;;  %v120_v51 = vsub.f32 %v88_v46, %v116_v48  ;;  %v96_v52 = vmul.f32 32.0, %v88_v46 }
 0x10c   :  { %v147_v53 = vadd.f32 %v145_v47, %v143_v50  ;;  %v98_v54 = vsub.f32 %v96_v52, %v92_v49  ;;  %v138_v55 = vmul.f32 0.9, %v120_v51 }
 0x10e   :  { %150 = vst.msk [vmem:[#allocation2 + $0x8] sm:$0xff] %vm60_vm3, %v147_v53  ;;  %v136_v56 = vmul.f32 0.003125, %v98_v54 }
 0x110   :  { %v140_v58 = vadd.f32 %v138_v55, %v136_v56 }
 0x112   :  { %v146_v59 = vadd.f32 %v144_v57, %v140_v58 }
 0x114   :  { %149 = vst.msk [vmem:[#allocation2] sm:$0xff] %vm60_vm3, %v146_v59 }
 0x115   :  { %v155_v60 = vld [vmem:[#allocation2 + $0x8] sm:$0xff] }
 0x116   :  { %v157_v63 = vsel %vm60_vm3, %v155_v60, 0.0 }
 0x11b   :  { %v154_v61 = vld [vmem:[#allocation2] sm:$0xff] }
 0x11c   :  { %v156_v62 = vsel %vm60_vm3, %v154_v61, 0.0 }
 0x11d   :  { %v158_v0 = vadd.f32 %v157_v63, %v156_v62 }
 0x11f   :  { %159 = vadd.xlane.f32.xlu2 %v158_v0 }
 0x192   :  { %v160_v1 = vpop.xlane.xlu2 %159 }
 0x193   :  { %v161_v2 = vrot.slane %v160_v1, 4 }
 0x195   :  { %v162_v3 = vadd.f32 %v161_v2, %v160_v1 }
 0x197   :  { %v163_v4 = vrot.slane %v162_v3, 2 }
 0x199   :  { %v164_v5 = vadd.f32 %v163_v4, %v162_v3 }
 0x19b   :  { %v165_v6 = vrot.slane %v164_v5, 1 }
 0x19d   :  { %v166_v7 = vadd.f32 %v165_v6, %v164_v5 }
 0x19f   :  { %203 = vpush %v166_v7 }
 0x1d0   :  { %s204_s20 = spop %203 }
 0x1d1   :  { %v171_v8 = vstv %s204_s20 }
 0x1d2   :  { %v172_v10 = vsel %vm170_vm7, %v171_v8, 0.0 }
 0x1d3   :  { %173 = vst [vmem:[#allocation3] sm:$0xff] %v172_v10 }
 0x1d4   :  { %184 = dma.vmem_to_hbm [thread:$0]  %s180_s1, 128, %s182_s19, [#allocation4]  }
 0x1d5   :  { %242 = dma.done.wait [#allocation4], 128  }
 0x1d6   :  { %243 = vsyncadd [#allocation4], 4294967168 }
 0x1d7   :  { %189 = vsyncpa [#allocation4], 1 }

</bundles_post_ra>
